<compile_context>
chip_gen: v5e
topology: v5e:2x2
jax: 0.10.0
libtpu: 0.0.40
codegen_flags: <defaults>
</compile_context>

<pallas_src>
import jax
import jax.numpy as jnp
from jax.experimental import pallas as pl
from jax.experimental.pallas import tpu as pltpu


_LANES = 128          # TPU lane width: keep the last dim lane-dense
_ROW_BLOCK = 2048     # 2048 x 128 f32 = 1 MiB per tile (multiple of 8 sublanes)


def _copy_kernel(x_ref, o_ref):
    """Pure streaming copy of one lane-dense tile (the non-inplace clone)."""
    o_ref[...] = x_ref[...]


def _clone_pallas(batch):
    """Non-inplace clone of a (B, C, H, W) batch via a lane-dense Pallas memcpy."""
    B, C, H, W = batch.shape
    n = B * C * H * W

    if n % _LANES == 0:
        rows = n // _LANES
        flat = batch.reshape(rows, _LANES)
        if rows <= _ROW_BLOCK:
            block_rows = rows            # full-extent block: always a legal block shape
        else:
            block_rows = _ROW_BLOCK      # multiple of 8 sublanes; edge blocks auto-padded
        grid = (pl.cdiv(rows, block_rows),)
        out = pl.pallas_call(
            _copy_kernel,
            out_shape=jax.ShapeDtypeStruct((rows, _LANES), batch.dtype),
            grid=grid,
            in_specs=[pl.BlockSpec((block_rows, _LANES), lambda i: (i, 0))],
            out_specs=pl.BlockSpec((block_rows, _LANES), lambda i: (i, 0)),
            compiler_params=pltpu.CompilerParams(
                dimension_semantics=("parallel",),          # megacore-shardable on v7x
                vmem_limit_bytes=32 * 1024 * 1024,          # tiles are ~1 MiB; plenty of headroom
            ),
        )(flat)
        return out.reshape(B, C, H, W)

    # Fallback for total sizes not divisible by 128: single full-extent block.
    # TODO(synk): for very large non-128-divisible batches, pad to a lane multiple instead.
    flat = batch.reshape(1, n)
    out = pl.pallas_call(
        _copy_kernel,
        out_shape=jax.ShapeDtypeStruct((1, n), batch.dtype),
        in_specs=[pl.BlockSpec((1, n), lambda: (0, 0))],
        out_specs=pl.BlockSpec((1, n), lambda: (0, 0)),
    )(flat)
    return out.reshape(B, C, H, W)


class ABCRandomMix:
    """JAX/Pallas port of the abstract RandomMixup/RandomCutMix parent class."""

    def __init__(self, p: float = 0.5, alpha: float = 1.0, inplace: bool = False):
        assert alpha > 0, "Alpha param can't be zero."
        self.p = p
        self.alpha = alpha
        self.inplace = inplace

    def mix_data(self, data, lmbd, index):
        # TODO(synk): abstract in the parent class (implemented by RandomMixup / RandomCutMix)
        raise NotImplementedError

    def __call__(self, batch, key):
        if batch.ndim != 4:
            raise ValueError(f"Batch ndim should be 4. Got {batch.ndim}")
        if not jnp.issubdtype(batch.dtype, jnp.floating):
            raise TypeError(f"Batch dtype should be a float tensor. Got {batch.dtype}.")

        B = batch.shape[0]

        # JAX arrays are immutable, so the Pallas copy is only needed to mirror
        # PyTorch's non-inplace clone; inplace=True skips the HBM traffic entirely.
        batch_out = batch if self.inplace else _clone_pallas(batch)

        # index = torch.arange(B).roll(1, 0): compile-time constant given B -> plain XLA.
        index = jnp.roll(jnp.arange(B, dtype=jnp.int32), 1)

        k_beta, k_coin = jax.random.split(key)
        # Single host sync for the Bernoulli coin (matches torch.rand(1).item()); it must
        # gate a Python-level branch because mix_data is abstract (not traceable).
        coin = float(jax.random.uniform(k_coin, ()))

        if coin >= self.p:
            lmbd = jnp.ones((B, 1), dtype=jnp.float32)
            return batch_out, lmbd, index

        # lambda_param ~ Dirichlet([alpha, alpha])[0] == Beta(alpha, alpha); kept as a
        # traced device scalar (no host pull) — only consumed by mix_data subclasses.
        lambda_param = jax.random.beta(k_beta, self.alpha, self.alpha)
        return self.mix_data(batch_out, lambda_param, index)


if __name__ == "__main__":
    key = jax.random.PRNGKey(0)
    k_data, k_fwd = jax.random.split(key)

    B, C, H, W = 2, 4, 16, 16
    x = jax.random.normal(k_data, (B, C, H, W), dtype=jnp.float32)

    # p=0.0 guarantees the (well-defined) non-mix branch is taken, since
    # mix_data is abstract in this parent class.
    module = ABCRandomMix(p=0.0, alpha=1.0, inplace=False)
    out, lmbd, index = module(x, k_fwd)

    out = jax.block_until_ready(out)
    lmbd = jax.block_until_ready(lmbd)
    index = jax.block_until_ready(index)

    # correctness checks against plain-JAX reference
    assert out.shape == (B, C, H, W) and out.dtype == x.dtype
    assert jnp.allclose(out, x), "clone mismatch"
    assert lmbd.shape == (B, 1) and jnp.allclose(lmbd, jnp.ones((B, 1), jnp.float32))
    ref_index = jnp.roll(jnp.arange(B, dtype=jnp.int32), 1)
    assert jnp.array_equal(index, ref_index), "index roll mismatch"

    # also exercise a shape whose row count exceeds one block (multi-step grid path)
    x_big = jax.random.normal(k_data, (4, 3, 256, 512), dtype=jnp.float32)
    out_big = jax.block_until_ready(_clone_pallas(x_big))
    assert jnp.allclose(out_big, x_big), "big clone mismatch"

    print("KERNEL_OK")
</pallas_src>

<mosaic_0001>
module attributes {stable_mosaic.version = 11 : i64} {
  func.func @_copy_kernel(%arg0: i32, %arg1: memref<16x128xf32, #tpu.memory_space<vmem>>, %arg2: memref<16x128xf32, #tpu.memory_space<vmem>>) attributes {dimension_semantics = [#tpu.dimension_semantics<parallel>], iteration_bounds = array<i64: 1>, scalar_prefetch = 0 : i64, scratch_operands = 0 : i64, tpu.core_type = #tpu.core_type<tc>, window_params = [{transform_indices = @transform_0, window_bounds = array<i64: 16, 128>}, {transform_indices = @transform_1, window_bounds = array<i64: 16, 128>}]} {
    %c0 = arith.constant 0 : index
    %c0_0 = arith.constant 0 : index
    %0 = vector.load %arg1[%c0, %c0_0] : memref<16x128xf32, #tpu.memory_space<vmem>>, vector<16x128xf32>
    %c0_1 = arith.constant 0 : index
    %c0_2 = arith.constant 0 : index
    %1 = vector.load %arg2[%c0_1, %c0_2] : memref<16x128xf32, #tpu.memory_space<vmem>>, vector<16x128xf32>
    tpu.vector_store %arg2[%c0_1, %c0_2], %0 {strides = array<i32>} : memref<16x128xf32, #tpu.memory_space<vmem>>, vector<16x128xf32>,
    return
  }
  func.func @transform_0(%arg0: i32) -> (i32, i32) {
    %c0_i32 = arith.constant 0 : i32
    %c0_i32_0 = arith.constant 0 : i32
    return %arg0, %c0_i32 : i32, i32
  }
  func.func @transform_1(%arg0: i32) -> (i32, i32) {
    %c0_i32 = arith.constant 0 : i32
    %c0_i32_0 = arith.constant 0 : i32
    return %arg0, %c0_i32 : i32, i32
  }
}

</mosaic_0001>

<bundles_post_ra>
// kernel: tpu_custom_call.1
= control target key start
LH: loop header
LB: loop body
LE: loop exit
PB: predicated region body
PF: predicated region fallthrough
CT: control target
= control target key end

     0   :  { %6 = vsyncpa [#allocation3], 0  ;;  %s124_s0 = inlined_call_operand.hbm [shape: f32[16,128], index: 0, kind: input, shape index: {}]   ;;  %s125_s1 = inlined_call_operand.hbm [shape: f32[16,128], index: 1, kind: output, shape index: {}]  }
   0x1   :  { %7 = vsyncpa [#allocation4], 0  ;;  %s12_s8 = sshll.u32 %s124_s0, 4  ;;  %s104_s9 = smov [#allocation2]   ;;  %s13_s8 = int_to_ptr.hbm [resolvable:$true] %s12_s8 }
   0x2   :  { %s14_s10 = sshll.u32 %s104_s9, 4  ;;  %s105_s11 = smov 128   ;;  %s15_s10 = int_to_ptr.vmem [resolvable:$true] %s14_s10 }
   0x3   :  { %s106_s12 = smov 8  }
   0x4   :  { %20 = dma.hbm_to_vmem [thread:$0]  %s13_s8, 256, %s15_s10, [#allocation3], %s105_s11, %s105_s11, %s106_s12  }
   0x5   :  { %100 = dma.done.wait [#allocation3], 256  }
   0x6   :  { %101 = vsyncadd [#allocation3], 4294967040  ;;  %s107_s13 = smov [#allocation5]   ;;  %s35_s17 = sshll.u32 %s125_s1, 4  ;;  %v25_v0 = vld [vmem:[#allocation2] sm:$0xff]  ;;  %v26_v1 = vld [vmem:[#allocation2 + $0x8] sm:$0xff]  ;;  %s36_s17 = int_to_ptr.hbm [resolvable:$true] %s35_s17 }
   0x7   :  { %s33_s14 = sshll.u32 %s107_s13, 4  ;;  %27 = vst [vmem:[#allocation5] sm:$0xff] %v25_v0  ;;  %s34_s14 = int_to_ptr.vmem [resolvable:$true] %s33_s14 }
   0x8   :  { %28 = vst [vmem:[#allocation5 + $0x8] sm:$0xff] %v26_v1 }
   0x9   :  { %41 = dma.vmem_to_hbm [thread:$0]  %s34_s14, 256, %s36_s17, [#allocation4], %s105_s11, %s105_s11, %s106_s12  }
   0xa   :  { %102 = dma.done.wait [#allocation4], 256  }
   0xb   :  { %103 = vsyncadd [#allocation4], 4294967040 }
   0xc   :  { %46 = vsyncpa [#allocation3], 1 }
   0xd   :  { %47 = vsyncpa [#allocation4], 1 }

</bundles_post_ra>
